<compile_context>
chip_gen: v5e
topology: v5e:2x2
jax: 0.10.0
libtpu: 0.0.40
codegen_flags: <defaults>
</compile_context>

<pallas_src>
import functools
import math

import jax
import jax.numpy as jnp
from jax import lax
from jax.experimental import pallas as pl
from jax.experimental.pallas import tpu as pltpu


def _round_up(x, m):
    return ((x + m - 1) // m) * m


# ---------------------------------------------------------------------------
# Kernel 1a: generic row-tiled linear projection  y = x @ w + b
# (weights/bias VMEM-resident across the row grid; x cast to w.dtype in-kernel)
# ---------------------------------------------------------------------------
def _linear_kernel(x_ref, w_ref, b_ref, o_ref):
    x = x_ref[...].astype(w_ref.dtype)                 # in-kernel cast (VPU)
    y = jnp.dot(x, w_ref[...], preferred_element_type=jnp.float32)
    y = y + b_ref[...].astype(jnp.float32)
    o_ref[...] = y.astype(o_ref.dtype)


def _linear_rows(x, w, b, out_dtype, *, row_tile=512):
    M, E = x.shape
    N = w.shape[1]
    row_tile = max(8, (row_tile // 8) * 8)
    tr = M if M <= row_tile else row_tile
    grid = (pl.cdiv(M, tr),)
    cost = pl.CostEstimate(
        flops=2 * M * E * N,
        transcendentals=0,
        bytes_accessed=(M * E * x.dtype.itemsize
                        + (E * N + N) * w.dtype.itemsize
                        + M * N * jnp.dtype(out_dtype).itemsize))
    return pl.pallas_call(
        _linear_kernel,
        out_shape=jax.ShapeDtypeStruct((M, N), out_dtype),
        grid_spec=pltpu.PrefetchScalarGridSpec(
            num_scalar_prefetch=0,
            grid=grid,
            in_specs=[
                pl.BlockSpec((tr, E), lambda i: (i, 0)),
                pl.BlockSpec((E, N), lambda i: (0, 0)),    # weight: resident
                pl.BlockSpec((1, N), lambda i: (0, 0)),    # bias:   resident
            ],
            out_specs=pl.BlockSpec((tr, N), lambda i: (i, 0)),
        ),
        compiler_params=pltpu.CompilerParams(
            dimension_semantics=("parallel",)),
        cost_estimate=cost,
    )(x, w, b)


# ---------------------------------------------------------------------------
# Kernel 1b: fused QKV projection for self-attention (query is key is value).
# One (E, 3*Hp) weight -> one input DMA + one wide MXU matmul per row tile.
# ---------------------------------------------------------------------------
def _qkv_fused_kernel(x_ref, w_ref, b_ref, q_ref, k_ref, v_ref):
    x = x_ref[...].astype(w_ref.dtype)
    y = jnp.dot(x, w_ref[...], preferred_element_type=jnp.float32)
    y = y + b_ref[...].astype(jnp.float32)
    Hp = q_ref.shape[-1]
    q_ref[...] = y[:, :Hp].astype(q_ref.dtype)
    k_ref[...] = y[:, Hp:2 * Hp].astype(k_ref.dtype)
    v_ref[...] = y[:, 2 * Hp:].astype(v_ref.dtype)


def _qkv_fused(x, w3, b3, Hp, out_dtype, *, row_tile=512):
    M, E = x.shape
    N = w3.shape[1]                                     # 3 * Hp
    row_tile = max(8, (row_tile // 8) * 8)
    tr = M if M <= row_tile else row_tile
    grid = (pl.cdiv(M, tr),)
    cost = pl.CostEstimate(
        flops=2 * M * E * N,
        transcendentals=0,
        bytes_accessed=(M * E * x.dtype.itemsize
                        + (E * N + N) * w3.dtype.itemsize
                        + M * N * jnp.dtype(out_dtype).itemsize))
    return pl.pallas_call(
        _qkv_fused_kernel,
        out_shape=(jax.ShapeDtypeStruct((M, Hp), out_dtype),
                   jax.ShapeDtypeStruct((M, Hp), out_dtype),
                   jax.ShapeDtypeStruct((M, Hp), out_dtype)),
        grid_spec=pltpu.PrefetchScalarGridSpec(
            num_scalar_prefetch=0,
            grid=grid,
            in_specs=[
                pl.BlockSpec((tr, E), lambda i: (i, 0)),
                pl.BlockSpec((E, N), lambda i: (0, 0)),    # weights: resident
                pl.BlockSpec((1, N), lambda i: (0, 0)),    # biases:  resident
            ],
            out_specs=[
                pl.BlockSpec((tr, Hp), lambda i: (i, 0)),
                pl.BlockSpec((tr, Hp), lambda i: (i, 0)),
                pl.BlockSpec((tr, Hp), lambda i: (i, 0)),
            ],
        ),
        compiler_params=pltpu.CompilerParams(
            dimension_semantics=("parallel",)),
        cost_estimate=cost,
    )(x, w3, b3)


# ---------------------------------------------------------------------------
# Kernel 2: flash-style attention with online softmax.
# q arrives pre-scaled (scale folded into Wq/bq).
# ---------------------------------------------------------------------------
def _flash_attn_kernel(q_ref, k_ref, v_ref, o_ref, m_scr, l_scr, acc_scr, *,
                       kv_len, kv_tile, need_kv_mask):
    kv = pl.program_id(2)

    @pl.when(kv == 0)
    def _():
        m_scr[...] = jnp.full(m_scr.shape, -jnp.inf, dtype=m_scr.dtype)
        l_scr[...] = jnp.zeros(l_scr.shape, dtype=l_scr.dtype)
        acc_scr[...] = jnp.zeros(acc_scr.shape, dtype=acc_scr.dtype)

    q = q_ref[0]                      # (tq, Hp), already scaled
    k = k_ref[0]                      # (tk, Hp)
    v = v_ref[0]                      # (tk, Hp)

    # Contract the last dims of q and k directly — no explicit K transpose.
    s = lax.dot_general(q, k, dimension_numbers=(((1,), (1,)), ((), ())),
                        preferred_element_type=jnp.float32)     # (tq, tk) f32

    if need_kv_mask:   # static: only when the key length was padded
        col = kv * kv_tile + lax.broadcasted_iota(jnp.int32, s.shape, 1)
        s = jnp.where(col < kv_len, s, -jnp.inf)

    m_prev = m_scr[...]
    m_new = jnp.maximum(m_prev, jnp.max(s, axis=-1, keepdims=True))
    alpha = jnp.exp(m_prev - m_new)
    p = jnp.exp(s - m_new)
    l_scr[...] = alpha * l_scr[...] + jnp.sum(p, axis=-1, keepdims=True)
    acc_scr[...] = alpha * acc_scr[...] + jnp.dot(
        p.astype(v.dtype), v, preferred_element_type=jnp.float32)
    m_scr[...] = m_new

    @pl.when(kv == pl.num_programs(2) - 1)
    def _():
        # Exact divide: the approx (EUP) reciprocal saved nothing measurable
        # on a (tq, 1) vector but cost accuracy.
        o_ref[0] = (acc_scr[...] / l_scr[...]).astype(o_ref.dtype)


def _attention(q, k, v, out_dtype, *, tq_target=256, tk_target=256):
    B, Sq, Hp = q.shape
    _, Sk, _ = k.shape

    tq_target = max(8, (tq_target // 8) * 8)
    tk_target = max(8, (tk_target // 8) * 8)
    tq = Sq if Sq <= tq_target else tq_target
    tk = Sk if Sk <= tk_target else tk_target

    # Pad sequences to a tile multiple instead of shrinking the tile.
    Sq_pad = _round_up(Sq, tq)
    Sk_pad = _round_up(Sk, tk)
    if Sq_pad != Sq:
        q = jnp.pad(q, ((0, 0), (0, Sq_pad - Sq), (0, 0)))
    if Sk_pad != Sk:
        k = jnp.pad(k, ((0, 0), (0, Sk_pad - Sk), (0, 0)))
        v = jnp.pad(v, ((0, 0), (0, Sk_pad - Sk), (0, 0)))
    need_kv_mask = (Sk_pad != Sk)

    n_q_tiles = Sq_pad // tq
    grid = (B, n_q_tiles, Sk_pad // tk)

    itemsize = q.dtype.itemsize
    out_itemsize = jnp.dtype(out_dtype).itemsize
    cost = pl.CostEstimate(
        flops=4 * B * Sq_pad * Sk_pad * Hp,
        transcendentals=B * Sq_pad * Sk_pad,
        # K/V are re-fetched once per q tile.
        bytes_accessed=(B * Sq_pad * Hp * itemsize
                        + 2 * B * Sk_pad * Hp * itemsize * n_q_tiles
                        + B * Sq_pad * Hp * out_itemsize))

    kernel = functools.partial(_flash_attn_kernel, kv_len=Sk, kv_tile=tk,
                               need_kv_mask=need_kv_mask)
    return pl.pallas_call(
        kernel,
        out_shape=jax.ShapeDtypeStruct((B, Sq_pad, Hp), out_dtype),
        grid_spec=pltpu.PrefetchScalarGridSpec(
            num_scalar_prefetch=0,
            grid=grid,
            in_specs=[
                pl.BlockSpec((1, tq, Hp), lambda b, qi, ki: (b, qi, 0)),
                pl.BlockSpec((1, tk, Hp), lambda b, qi, ki: (b, ki, 0)),
                pl.BlockSpec((1, tk, Hp), lambda b, qi, ki: (b, ki, 0)),
            ],
            out_specs=pl.BlockSpec((1, tq, Hp), lambda b, qi, ki: (b, qi, 0)),
            scratch_shapes=[
                pltpu.VMEM((tq, 1), jnp.float32),    # running max
                pltpu.VMEM((tq, 1), jnp.float32),    # running denom
                pltpu.VMEM((tq, Hp), jnp.float32),   # output accumulator
            ],
        ),
        compiler_params=pltpu.CompilerParams(
            dimension_semantics=("parallel", "parallel", "arbitrary")),
        cost_estimate=cost,
    )(q, k, v)


# ---------------------------------------------------------------------------
# Public wrapper: matches AttentionHead.forward (mask-free path).
# ---------------------------------------------------------------------------
def attention_head(query, key, value, wq, bq, wk, bk, wv, bv, *,
                   matmul_dtype=jnp.bfloat16, row_tile=512, tq=256, tk=256):
    """query/key/value: (B, S, E); w*: (E, H); b*: (H,). Returns (B, Sq, H).

    matmul_dtype: MXU operand / q,k,v storage dtype (default bf16; accumulation
    and softmax math stay f32).  On v5e pass tk=128."""
    B, Sq, E = query.shape
    _, Sk, _ = key.shape
    H = wq.shape[1]
    Hp = _round_up(H, 128)                  # lane-dense head dim
    out_dtype = query.dtype
    cdt = jnp.dtype(matmul_dtype) if matmul_dtype is not None else jnp.dtype(out_dtype)

    scale = 1.0 / math.sqrt(H)              # true head_dim, not the padded one

    # Zero-pad head_dim to Hp (padded q/k columns are exact zeros -> QK^T
    # unchanged; padded v columns give zero output columns, sliced off).
    # The softmax scale is folded into Wq/bq here (tiny weight-side op).
    def pad_w(w, s=1.0):
        return jnp.pad(w * s, ((0, 0), (0, Hp - H))).astype(cdt)

    def pad_b(b, s=1.0):
        return jnp.pad(b * s, (0, Hp - H)).reshape(1, Hp).astype(jnp.float32)

    self_attn = (query is key) and (key is value) and (Sq == Sk)

    if self_attn:
        x = query.reshape(B * Sq, E)
        w3 = jnp.concatenate([pad_w(wq, scale), pad_w(wk), pad_w(wv)], axis=1)
        b3 = jnp.concatenate([pad_b(bq, scale), pad_b(bk), pad_b(bv)], axis=1)
        q2, k2, v2 = _qkv_fused(x, w3, b3, Hp, cdt, row_tile=row_tile)
    else:
        q2 = _linear_rows(query.reshape(B * Sq, E), pad_w(wq, scale),
                          pad_b(bq, scale), cdt, row_tile=row_tile)
        k2 = _linear_rows(key.reshape(B * Sk, E), pad_w(wk), pad_b(bk),
                          cdt, row_tile=row_tile)
        v2 = _linear_rows(value.reshape(B * Sk, E), pad_w(wv), pad_b(bv),
                          cdt, row_tile=row_tile)

    q3 = q2.reshape(B, Sq, Hp)
    k3 = k2.reshape(B, Sk, Hp)
    v3 = v2.reshape(B, Sk, Hp)

    out_p = _attention(q3, k3, v3, out_dtype, tq_target=tq, tk_target=tk)
    # TODO(synk): if the consumer accepts the Hp-padded head dim, skip this
    # lane-masked slice (H << 128) and fuse it into the next op instead.
    return out_p[:, :Sq, :H]


# ---------------------------------------------------------------------------
# Reference + test harness
# ---------------------------------------------------------------------------
def _init_linear(key, in_features, out_features):
    kw, kb = jax.random.split(key)
    bound = 1.0 / math.sqrt(in_features)
    w = jax.random.uniform(kw, (in_features, out_features),
                           minval=-bound, maxval=bound, dtype=jnp.float32)
    b = jax.random.uniform(kb, (out_features,),
                           minval=-bound, maxval=bound, dtype=jnp.float32)
    return w, b


def _reference(query, key, value, wq, bq, wk, bk, wv, bv):
    q = query @ wq + bq
    k = key @ wk + bk
    v = value @ wv + bv
    scores = jnp.einsum('bqh,bkh->bqk', q, k) / math.sqrt(q.shape[-1])
    weights = jax.nn.softmax(scores, axis=-1)
    return jnp.einsum('bqk,bkh->bqh', weights, v)


if __name__ == "__main__":
    B, S, E, H = 2, 8, 32, 32

    root = jax.random.PRNGKey(0)
    k_q, k_k, k_v, k_xq, k_xk, k_xv, k_y1, k_y2 = jax.random.split(root, 8)

    wq, bq = _init_linear(k_q, E, H)
    wk, bk = _init_linear(k_k, E, H)
    wv, bv = _init_linear(k_v, E, H)

    query = jax.random.normal(k_xq, (B, S, E), dtype=jnp.float32)
    key = jax.random.normal(k_xk, (B, S, E), dtype=jnp.float32)
    value = jax.random.normal(k_xv, (B, S, E), dtype=jnp.float32)

    ref = _reference(query, key, value, wq, bq, wk, bk, wv, bv)

    # Tolerances: the softmax normalization is now an exact divide; the
    # remaining error is bf16 MXU-operand rounding (default path) and the
    # backend's default f32 matmul precision in the pure-JAX reference.

    # 1) f32 MXU operands, separate q/k/v projections.
    out_f32 = jax.block_until_ready(
        attention_head(query, key, value, wq, bq, wk, bk, wv, bv,
                       matmul_dtype=jnp.float32))
    assert out_f32.shape == (B, S, H)
    assert jnp.allclose(out_f32, ref, atol=2e-2, rtol=2e-2), \
        float(jnp.max(jnp.abs(out_f32 - ref)))

    # 2) default bf16 MXU operands (q/k/v stored in bf16 between kernels).
    out_bf16 = jax.block_until_ready(
        attention_head(query, key, value, wq, bq, wk, bk, wv, bv))
    assert out_bf16.shape == (B, S, H)
    assert jnp.allclose(out_bf16, ref, atol=3e-2, rtol=3e-2), \
        float(jnp.max(jnp.abs(out_bf16 - ref)))

    # 3) self-attention (query is key is value) -> fused (E, 3*Hp) projection.
    ref_self = _reference(query, query, query, wq, bq, wk, bk, wv, bv)
    out_self = jax.block_until_ready(
        attention_head(query, query, query, wq, bq, wk, bk, wv, bv,
                       matmul_dtype=jnp.float32))
    assert out_self.shape == (B, S, H)
    assert jnp.allclose(out_self, ref_self, atol=2e-2, rtol=2e-2), \
        float(jnp.max(jnp.abs(out_self - ref_self)))

    # 4) awkward sequence lengths -> tile padding + in-kernel key masking.
    Sq2, Sk2 = 12, 20
    query2 = jax.random.normal(k_y1, (B, Sq2, E), dtype=jnp.float32)
    kv2 = jax.random.normal(k_y2, (B, Sk2, E), dtype=jnp.float32)
    ref2 = _reference(query2, kv2, kv2, wq, bq, wk, bk, wv, bv)
    out2 = jax.block_until_ready(
        attention_head(query2, kv2, kv2, wq, bq, wk, bk, wv, bv,
                       matmul_dtype=jnp.float32, tq=8, tk=8))
    assert out2.shape == (B, Sq2, H)
    assert jnp.allclose(out2, ref2, atol=2e-2, rtol=2e-2), \
        float(jnp.max(jnp.abs(out2 - ref2)))

    print("KERNEL_OK")
</pallas_src>

<mosaic_0001>
module attributes {stable_mosaic.version = 11 : i64} {
  func.func @_linear_kernel(%arg0: i32, %arg1: memref<16x32xf32, #tpu.memory_space<vmem>>, %arg2: memref<32x128xf32, #tpu.memory_space<vmem>>, %arg3: memref<1x128xf32, #tpu.memory_space<vmem>>, %arg4: memref<16x128xf32, #tpu.memory_space<vmem>>) attributes {dimension_semantics = [#tpu.dimension_semantics<parallel>], iteration_bounds = array<i64: 1>, scalar_prefetch = 0 : i64, scratch_operands = 0 : i64, tpu.core_type = #tpu.core_type<tc>, window_params = [{transform_indices = @transform_0, window_bounds = array<i64: 16, 32>}, {pipeline_mode = #tpu.pipeline_mode<synchronous>, transform_indices = @transform_1, window_bounds = array<i64: 32, 128>}, {pipeline_mode = #tpu.pipeline_mode<synchronous>, transform_indices = @transform_2, window_bounds = array<i64: 1, 128>}, {transform_indices = @transform_3, window_bounds = array<i64: 16, 128>}]} {
    %c0 = arith.constant 0 : index
    %c0_0 = arith.constant 0 : index
    %0 = vector.load %arg1[%c0, %c0_0] : memref<16x32xf32, #tpu.memory_space<vmem>>, vector<16x32xf32>
    %c0_1 = arith.constant 0 : index
    %c0_2 = arith.constant 0 : index
    %1 = vector.load %arg2[%c0_1, %c0_2] : memref<32x128xf32, #tpu.memory_space<vmem>>, vector<32x128xf32>
    %cst = arith.constant dense<0.000000e+00> : vector<16x128xf32>
    %2 = tpu.matmul %0, %1, %cst {dimension_numbers = #tpu.dot_dimension_numbers<[1], [0], [0], [1], [0, 0, 1, 1], [], []>} : vector<16x32xf32>, vector<32x128xf32>, vector<16x128xf32> -> vector<16x128xf32>
    %c0_3 = arith.constant 0 : index
    %c0_4 = arith.constant 0 : index
    %3 = vector.load %arg3[%c0_3, %c0_4] : memref<1x128xf32, #tpu.memory_space<vmem>>, vector<1x128xf32>
    %4 = vector.broadcast %3 : vector<1x128xf32> to vector<16x128xf32>
    %5 = arith.addf %2, %4 : vector<16x128xf32>
    %c0_5 = arith.constant 0 : index
    %c0_6 = arith.constant 0 : index
    %6 = vector.load %arg4[%c0_5, %c0_6] : memref<16x128xf32, #tpu.memory_space<vmem>>, vector<16x128xf32>
    tpu.vector_store %arg4[%c0_5, %c0_6], %5 {strides = array<i32>} : memref<16x128xf32, #tpu.memory_space<vmem>>, vector<16x128xf32>,
    return
  }
  func.func @transform_0(%arg0: i32) -> (i32, i32) {
    %c0_i32 = arith.constant 0 : i32
    %c0_i32_0 = arith.constant 0 : i32
    return %arg0, %c0_i32 : i32, i32
  }
  func.func @transform_1(%arg0: i32) -> (i32, i32) {
    %c0_i32 = arith.constant 0 : i32
    %c0_i32_0 = arith.constant 0 : i32
    %c0_i32_1 = arith.constant 0 : i32
    return %c0_i32, %c0_i32_0 : i32, i32
  }
  func.func @transform_2(%arg0: i32) -> (i32, i32) {
    %c0_i32 = arith.constant 0 : i32
    %c0_i32_0 = arith.constant 0 : i32
    %c0_i32_1 = arith.constant 0 : i32
    return %c0_i32, %c0_i32_0 : i32, i32
  }
  func.func @transform_3(%arg0: i32) -> (i32, i32) {
    %c0_i32 = arith.constant 0 : i32
    %c0_i32_0 = arith.constant 0 : i32
    return %arg0, %c0_i32 : i32, i32
  }
}

</mosaic_0001>

<bundles_post_ra>
// kernel: tpu_custom_call.1
= control target key start
LH: loop header
LB: loop body
LE: loop exit
PB: predicated region body
PF: predicated region fallthrough
CT: control target
= control target key end

     0   :  { %8 = vsyncpa [#allocation3], 0  ;;  %s245_s0 = inlined_call_operand.hbm [shape: f32[16,32], index: 0, kind: input, shape index: {}]   ;;  %s246_s1 = inlined_call_operand.hbm [shape: f32[32,128], index: 1, kind: input, shape index: {}]   ;;  %s247_s2 = inlined_call_operand.vmem [shape: f32[1,128], index: 2, kind: input, shape index: {}]   ;;  %s248_s3 = inlined_call_operand.hbm [shape: f32[16,128], index: 3, kind: output, shape index: {}]  }
   0x1   :  { %9 = vsyncpa [#allocation6], 0 }
   0x2   :  { %10 = vsyncpa [#allocation4], 0  ;;  %s15_s14 = sshll.u32 %s245_s0, 4  ;;  %s199_s15 = smov [#allocation2]   ;;  %s16_s14 = int_to_ptr.hbm [resolvable:$true] %s15_s14 }
   0x3   :  { %s17_s16 = sshll.u32 %s199_s15, 4  ;;  %s28_s19 = sshll.u32 %s246_s1, 4  ;;  %s18_s16 = int_to_ptr.vmem [resolvable:$true] %s17_s16  ;;  %s29_s19 = int_to_ptr.hbm [resolvable:$true] %s28_s19 }
   0x4   :  { %s200_s20 = smov 128   ;;  %s201_s21 = smov 8  }
   0x5   :  { %23 = dma.hbm_to_vmem [thread:$0]  %s16_s14, 256, %s18_s16, [#allocation3], %s200_s20, %s200_s20, %s201_s21  }
   0x6   :  { %s202_s22 = smov [#allocation5]  }
   0x7   :  { %s30_s23 = sshll.u32 %s202_s22, 4  ;;  %s31_s23 = int_to_ptr.vmem [resolvable:$true] %s30_s23 }
   0x8   :  { %36 = dma.hbm_to_vmem [thread:$0]  %s29_s19, 512, %s31_s23, [#allocation6], %s200_s20, %s200_s20, %s201_s21  }
   0x9   :  { %193 = dma.done.wait [#allocation3], 256  }
   0xa   :  { %194 = vsyncadd [#allocation3], 4294967040 }
   0xb   :  { %195 = dma.done.wait [#allocation6], 512  }
   0xc   :  { %196 = vsyncadd [#allocation6], 4294966784  ;;  %v52_v0 = vld [vmem:[#allocation5 + $0x18] sm:$0xff]  ;;  %v51_v1 = vld [vmem:[#allocation5 + $0x10] sm:$0xff]  ;;  %vm57_vm0 = vcmask 261120   ;;  %s203_s24 = smov [#allocation7]  }
   0xd   :  { %76 = vmatpush.msra.mxu0 %v52_v0  ;;  %111 = vmatpush.msra.mxu1 %v52_v0  ;;  %v50_v2 = vld [vmem:[#allocation5 + $0x8] sm:$0xff]  ;;  %v49_v3 = vld [vmem:[#allocation5] sm:$0xff]  ;;  %v47_v4 = vld [vmem:[#allocation2] sm:$0xff]  ;;  %s93_s25 = sshll.u32 %s203_s24, 4  ;;  %s95_s28 = sshll.u32 %s248_s3, 4  ;;  %s94_s25 = int_to_ptr.vmem [resolvable:$true] %s93_s25  ;;  %s96_s28 = int_to_ptr.hbm [resolvable:$true] %s95_s28 }
   0xe   :  { %v48_v5 = vld [vmem:[#allocation2 + $0x8] sm:$0xff]  ;;  %v120_v6 = vld [vmem:[%s247_s2] ss:$0 sm:$0xff] }
   0xf   :  { %77 = vmatpush.msra.mxu0 %v51_v1  ;;  %112 = vmatpush.msra.mxu1 %v51_v1 }
  0x11   :  { %78 = vmatpush.msra.mxu0 %v50_v2  ;;  %113 = vmatpush.msra.mxu1 %v50_v2 }
  0x13   :  { %79 = vmatpush.msra.mxu0 %v49_v3  ;;  %114 = vmatpush.msra.mxu1 %v49_v3 }
  0x14   :  { %109 = vmatmul.msk.f32.vlgmr.msra.gmra.mxu0 %vm57_vm0, %v47_v4  ;;  %110 = vmatmul.msk.f32.vlgmr.msra.gmra.mxu1 %vm57_vm0, %v48_v5 }
  0x91   :  { %v81_v7 = vpop.f32.mrf.mxu0  ;;  %v84_v8 = vpop.f32.mrf.mxu1 }
  0x92   :  { %v82_v9 = vadd.f32 %v120_v6, %v81_v7  ;;  %v85_v10 = vadd.f32 %v120_v6, %v84_v8 }
  0x94   :  { %87 = vst [vmem:[#allocation7] sm:$0xff] %v82_v9 }
  0x95   :  { %88 = vst [vmem:[#allocation7 + $0x8] sm:$0xff] %v85_v10 }
  0x96   :  { %101 = dma.vmem_to_hbm [thread:$0]  %s94_s25, 256, %s96_s28, [#allocation4], %s200_s20, %s200_s20, %s201_s21  }
  0x97   :  { %197 = dma.done.wait [#allocation4], 256  }
  0x98   :  { %198 = vsyncadd [#allocation4], 4294967040 }
  0x99   :  { %106 = vsyncpa [#allocation3], 1 }
  0x9a   :  { %107 = vsyncpa [#allocation6], 1 }
  0x9b   :  { %108 = vsyncpa [#allocation4], 1 }

</bundles_post_ra>
